<compile_context>
chip_gen: v6e
topology: v6e:2x2x1
jax: 0.10.0
libtpu: 0.0.40
codegen_flags: <defaults>
</compile_context>

<pallas_src>
import jax
import jax.numpy as jnp
from jax.experimental import pallas as pl
from jax.experimental.pallas import tpu as pltpu


def _round_up(x, m):
    return ((x + m - 1) // m) * m


def _img_nn_fused_kernel(x_ref, w1_ref, b1_ref, w2_ref, b2_ref, w3_ref, b3_ref,
                         o_ref):
    """One M-tile of the fused 3x (Linear + tanh).

    Weights/biases are VMEM-resident (constant index_map); hidden activations
    live in vregs.  MXU accumulates in f32 regardless of weight dtype; biases
    and the tanh path stay f32.
    """
    cdt = w1_ref.dtype  # MXU operand dtype (f32 or bf16)
    h = x_ref[...].astype(cdt)
    h = jnp.tanh(
        jnp.dot(h, w1_ref[...], preferred_element_type=jnp.float32)
        + b1_ref[...]
    )
    h = jnp.tanh(
        jnp.dot(h.astype(cdt), w2_ref[...], preferred_element_type=jnp.float32)
        + b2_ref[...]
    )
    h = jnp.tanh(
        jnp.dot(h.astype(cdt), w3_ref[...], preferred_element_type=jnp.float32)
        + b3_ref[...]
    )
    o_ref[...] = h.astype(o_ref.dtype)


def img_nn_forward(x, params, *, tile_m=128, weight_dtype=None):
    """Fused ImgNN forward: tanh(tanh(tanh(x@W1+b1)@W2+b2)@W3+b3).

    x: (M, K) f32; params: [(W1,b1),(W2,b2),(W3,b3)] with Wi (Din, Dout).
    Single pallas_call with a 1-D grid over M tiles; weights are loaded once
    (constant block index) and reused for every tile.
    """
    (w1, b1), (w2, b2), (w3, b3) = params
    M, K = x.shape
    assert w1.shape[0] == K
    N1, N2, N3 = w1.shape[1], w2.shape[1], w3.shape[1]
    assert w2.shape[0] == N1 and w3.shape[0] == N2
    assert b1.shape == (N1,) and b2.shape == (N2,) and b3.shape == (N3,)

    if weight_dtype is not None:
        w1 = w1.astype(weight_dtype)
        w2 = w2.astype(weight_dtype)
        w3 = w3.astype(weight_dtype)
    # Biases stay f32 and ride the (already f32) accumulate path.
    b1r = b1.astype(jnp.float32).reshape(1, N1)
    b2r = b2.astype(jnp.float32).reshape(1, N2)
    b3r = b3.astype(jnp.float32).reshape(1, N3)

    # M tile: multiple of 8 (sublane), capped by tile_m.  Sized for v7x's
    # 32 MiB scoped VMEM with double-buffered x/out tiles + resident weights.
    tm = _round_up(min(tile_m, _round_up(M, 8)), 8)
    Mp = _round_up(M, tm)
    xp = x if Mp == M else jnp.pad(x, ((0, Mp - M), (0, 0)))
    grid = (Mp // tm,)

    # VMEM footprint sanity: resident weights/biases (single-buffered, constant
    # index) + double-buffered x and out tiles + live hidden activations.
    wbytes = sum(int(a.size) * a.dtype.itemsize for a in (w1, w2, w3, b1r, b2r, b3r))
    tile_bytes = 2 * (tm * K * 4 + tm * N3 * 4) + tm * max(N1, N2, N3) * 4
    assert wbytes + tile_bytes < 16 * 1024 * 1024, "tile too large for scoped VMEM"

    cost = pl.CostEstimate(
        flops=2 * M * (K * N1 + N1 * N2 + N2 * N3),
        transcendentals=M * (N1 + N2 + N3),
        bytes_accessed=int(x.size) * x.dtype.itemsize + wbytes + M * N3 * 4,
    )

    out = pl.pallas_call(
        _img_nn_fused_kernel,
        out_shape=jax.ShapeDtypeStruct((Mp, N3), jnp.float32),
        grid=grid,
        in_specs=[
            pl.BlockSpec((tm, K), lambda i: (i, 0)),    # x: pipelined per M tile
            pl.BlockSpec((K, N1), lambda i: (0, 0)),    # W1: resident
            pl.BlockSpec((1, N1), lambda i: (0, 0)),    # b1: resident
            pl.BlockSpec((N1, N2), lambda i: (0, 0)),   # W2: resident
            pl.BlockSpec((1, N2), lambda i: (0, 0)),    # b2: resident
            pl.BlockSpec((N2, N3), lambda i: (0, 0)),   # W3: resident
            pl.BlockSpec((1, N3), lambda i: (0, 0)),    # b3: resident
        ],
        out_specs=pl.BlockSpec((tm, N3), lambda i: (i, 0)),
        compiler_params=pltpu.CompilerParams(
            dimension_semantics=("parallel",),          # v7x: both TensorCores
        ),
        cost_estimate=cost,
    )(xp, w1, b1r, w2, b2r, w3, b3r)

    return out if Mp == M else out[:M]


def init_img_nn_params(key, input_dim, output_dim, dtype=jnp.float32):
    """Deterministic init mimicking nn.Linear's U(-1/sqrt(fan_in), 1/sqrt(fan_in))."""
    dims = [(input_dim, output_dim), (output_dim, output_dim),
            (output_dim, output_dim)]
    params = []
    for (fan_in, fan_out) in dims:
        key, kw, kb = jax.random.split(key, 3)
        bound = 1.0 / jnp.sqrt(fan_in)
        w = jax.random.uniform(kw, (fan_in, fan_out), dtype, -bound, bound)
        b = jax.random.uniform(kb, (fan_out,), dtype, -bound, bound)
        params.append((w, b))
    return params


def img_nn_reference(x, params):
    h = x
    for (w, b) in params:
        h = jnp.tanh(h @ w + b)
    return h


if __name__ == "__main__":
    # Small shapes consistent with the module (input_dim -> output_dim MLP).
    batch, input_dim, output_dim = 8, 512, 256

    key = jax.random.PRNGKey(0)
    key, kx = jax.random.split(key)
    x = jax.random.normal(kx, (batch, input_dim), jnp.float32)
    params = init_img_nn_params(key, input_dim, output_dim)
    ref_small = img_nn_reference(x, params)

    # 1) f32 path, single M tile (grid=(1,)) -- exactness vs reference.
    out = jax.block_until_ready(img_nn_forward(x, params))
    assert out.shape == (batch, output_dim)
    assert jnp.allclose(out, ref_small, atol=1e-5, rtol=1e-5)

    # 2) Larger batch, multi-tile grid (320 rows / tile_m=64 -> 5 pipelined
    #    tiles, weights loaded once).  f32 path stays within 1e-5.
    key, kb = jax.random.split(key)
    xb = jax.random.normal(kb, (320, input_dim), jnp.float32)
    ref_big = img_nn_reference(xb, params)
    out_f32 = jax.block_until_ready(img_nn_forward(xb, params, tile_m=64))
    assert out_f32.shape == (320, output_dim)
    assert jnp.allclose(out_f32, ref_big, atol=1e-5, rtol=1e-5)

    # 3) bf16-weight path (halved weight DMA, bf16-native MXU) -- relaxed
    #    tolerance vs the f32 reference.
    out_bf16 = jax.block_until_ready(
        img_nn_forward(xb, params, tile_m=64, weight_dtype=jnp.bfloat16))
    assert jnp.allclose(out_bf16, ref_big, atol=5e-2, rtol=5e-2)

    # 4) Non-multiple batch exercises the pad-and-slice path.
    key, kc = jax.random.split(key)
    xc = jax.random.normal(kc, (20, input_dim), jnp.float32)
    out_pad = jax.block_until_ready(img_nn_forward(xc, params, tile_m=8))
    assert out_pad.shape == (20, output_dim)
    assert jnp.allclose(out_pad, img_nn_reference(xc, params), atol=1e-5, rtol=1e-5)

    print("KERNEL_OK")
</pallas_src>

<mosaic_0001>
module attributes {stable_mosaic.version = 11 : i64} {
  func.func @_img_nn_fused_kernel(%arg0: i32, %arg1: memref<8x512xf32, #tpu.memory_space<vmem>>, %arg2: memref<512x256xf32, #tpu.memory_space<vmem>>, %arg3: memref<1x256xf32, #tpu.memory_space<vmem>>, %arg4: memref<256x256xf32, #tpu.memory_space<vmem>>, %arg5: memref<1x256xf32, #tpu.memory_space<vmem>>, %arg6: memref<256x256xf32, #tpu.memory_space<vmem>>, %arg7: memref<1x256xf32, #tpu.memory_space<vmem>>, %arg8: memref<8x256xf32, #tpu.memory_space<vmem>>) attributes {dimension_semantics = [#tpu.dimension_semantics<parallel>], iteration_bounds = array<i64: 1>, scalar_prefetch = 0 : i64, scratch_operands = 0 : i64, tpu.core_type = #tpu.core_type<tc>, window_params = [{transform_indices = @transform_0, window_bounds = array<i64: 8, 512>}, {pipeline_mode = #tpu.pipeline_mode<synchronous>, transform_indices = @transform_1, window_bounds = array<i64: 512, 256>}, {pipeline_mode = #tpu.pipeline_mode<synchronous>, transform_indices = @transform_2, window_bounds = array<i64: 1, 256>}, {pipeline_mode = #tpu.pipeline_mode<synchronous>, transform_indices = @transform_3, window_bounds = array<i64: 256, 256>}, {pipeline_mode = #tpu.pipeline_mode<synchronous>, transform_indices = @transform_4, window_bounds = array<i64: 1, 256>}, {pipeline_mode = #tpu.pipeline_mode<synchronous>, transform_indices = @transform_5, window_bounds = array<i64: 256, 256>}, {pipeline_mode = #tpu.pipeline_mode<synchronous>, transform_indices = @transform_6, window_bounds = array<i64: 1, 256>}, {transform_indices = @transform_7, window_bounds = array<i64: 8, 256>}]} {
    %c0 = arith.constant 0 : index
    %c0_0 = arith.constant 0 : index
    %0 = vector.load %arg1[%c0, %c0_0] : memref<8x512xf32, #tpu.memory_space<vmem>>, vector<8x512xf32>
    %c0_1 = arith.constant 0 : index
    %c0_2 = arith.constant 0 : index
    %1 = vector.load %arg2[%c0_1, %c0_2] : memref<512x256xf32, #tpu.memory_space<vmem>>, vector<512x256xf32>
    %cst = arith.constant dense<0.000000e+00> : vector<8x256xf32>
    %2 = tpu.matmul %0, %1, %cst {dimension_numbers = #tpu.dot_dimension_numbers<[1], [0], [0], [1], [0, 0, 1, 1], [], []>} : vector<8x512xf32>, vector<512x256xf32>, vector<8x256xf32> -> vector<8x256xf32>
    %c0_3 = arith.constant 0 : index
    %c0_4 = arith.constant 0 : index
    %3 = vector.load %arg3[%c0_3, %c0_4] : memref<1x256xf32, #tpu.memory_space<vmem>>, vector<1x256xf32>
    %4 = vector.broadcast %3 : vector<1x256xf32> to vector<8x256xf32>
    %5 = arith.addf %2, %4 : vector<8x256xf32>
    %6 = math.tanh %5 : vector<8x256xf32>
    %c0_5 = arith.constant 0 : index
    %c0_6 = arith.constant 0 : index
    %7 = vector.load %arg4[%c0_5, %c0_6] : memref<256x256xf32, #tpu.memory_space<vmem>>, vector<256x256xf32>
    %cst_7 = arith.constant dense<0.000000e+00> : vector<8x256xf32>
    %8 = tpu.matmul %6, %7, %cst_7 {dimension_numbers = #tpu.dot_dimension_numbers<[1], [0], [0], [1], [0, 0, 1, 1], [], []>} : vector<8x256xf32>, vector<256x256xf32>, vector<8x256xf32> -> vector<8x256xf32>
    %c0_8 = arith.constant 0 : index
    %c0_9 = arith.constant 0 : index
    %9 = vector.load %arg5[%c0_8, %c0_9] : memref<1x256xf32, #tpu.memory_space<vmem>>, vector<1x256xf32>
    %10 = vector.broadcast %9 : vector<1x256xf32> to vector<8x256xf32>
    %11 = arith.addf %8, %10 : vector<8x256xf32>
    %12 = math.tanh %11 : vector<8x256xf32>
    %c0_10 = arith.constant 0 : index
    %c0_11 = arith.constant 0 : index
    %13 = vector.load %arg6[%c0_10, %c0_11] : memref<256x256xf32, #tpu.memory_space<vmem>>, vector<256x256xf32>
    %cst_12 = arith.constant dense<0.000000e+00> : vector<8x256xf32>
    %14 = tpu.matmul %12, %13, %cst_12 {dimension_numbers = #tpu.dot_dimension_numbers<[1], [0], [0], [1], [0, 0, 1, 1], [], []>} : vector<8x256xf32>, vector<256x256xf32>, vector<8x256xf32> -> vector<8x256xf32>
    %c0_13 = arith.constant 0 : index
    %c0_14 = arith.constant 0 : index
    %15 = vector.load %arg7[%c0_13, %c0_14] : memref<1x256xf32, #tpu.memory_space<vmem>>, vector<1x256xf32>
    %16 = vector.broadcast %15 : vector<1x256xf32> to vector<8x256xf32>
    %17 = arith.addf %14, %16 : vector<8x256xf32>
    %18 = math.tanh %17 : vector<8x256xf32>
    %c0_15 = arith.constant 0 : index
    %c0_16 = arith.constant 0 : index
    %19 = vector.load %arg8[%c0_15, %c0_16] : memref<8x256xf32, #tpu.memory_space<vmem>>, vector<8x256xf32>
    tpu.vector_store %arg8[%c0_15, %c0_16], %18 {strides = array<i32>} : memref<8x256xf32, #tpu.memory_space<vmem>>, vector<8x256xf32>,
    return
  }
  func.func @transform_0(%arg0: i32) -> (i32, i32) {
    %c0_i32 = arith.constant 0 : i32
    %c0_i32_0 = arith.constant 0 : i32
    return %arg0, %c0_i32 : i32, i32
  }
  func.func @transform_1(%arg0: i32) -> (i32, i32) {
    %c0_i32 = arith.constant 0 : i32
    %c0_i32_0 = arith.constant 0 : i32
    %c0_i32_1 = arith.constant 0 : i32
    return %c0_i32, %c0_i32_0 : i32, i32
  }
  func.func @transform_2(%arg0: i32) -> (i32, i32) {
    %c0_i32 = arith.constant 0 : i32
    %c0_i32_0 = arith.constant 0 : i32
    %c0_i32_1 = arith.constant 0 : i32
    return %c0_i32, %c0_i32_0 : i32, i32
  }
  func.func @transform_3(%arg0: i32) -> (i32, i32) {
    %c0_i32 = arith.constant 0 : i32
    %c0_i32_0 = arith.constant 0 : i32
    %c0_i32_1 = arith.constant 0 : i32
    return %c0_i32, %c0_i32_0 : i32, i32
  }
  func.func @transform_4(%arg0: i32) -> (i32, i32) {
    %c0_i32 = arith.constant 0 : i32
    %c0_i32_0 = arith.constant 0 : i32
    %c0_i32_1 = arith.constant 0 : i32
    return %c0_i32, %c0_i32_0 : i32, i32
  }
  func.func @transform_5(%arg0: i32) -> (i32, i32) {
    %c0_i32 = arith.constant 0 : i32
    %c0_i32_0 = arith.constant 0 : i32
    %c0_i32_1 = arith.constant 0 : i32
    return %c0_i32, %c0_i32_0 : i32, i32
  }
  func.func @transform_6(%arg0: i32) -> (i32, i32) {
    %c0_i32 = arith.constant 0 : i32
    %c0_i32_0 = arith.constant 0 : i32
    %c0_i32_1 = arith.constant 0 : i32
    return %c0_i32, %c0_i32_0 : i32, i32
  }
  func.func @transform_7(%arg0: i32) -> (i32, i32) {
    %c0_i32 = arith.constant 0 : i32
    %c0_i32_0 = arith.constant 0 : i32
    return %arg0, %c0_i32 : i32, i32
  }
}

</mosaic_0001>

<bundles_post_ra>
// kernel: tpu_custom_call.1
= control target key start
LH: loop header
LB: loop body
LE: loop exit
PB: predicated region body
PF: predicated region fallthrough
CT: control target
= control target key end

     0   :  { %12 = vsyncpa [#allocation3], 0  ;;  %s902_s0 = inlined_call_operand.hbm [shape: f32[8,512], index: 0, kind: input, shape index: {}]   ;;  %s903_s1 = inlined_call_operand.hbm [shape: f32[512,256], index: 1, kind: input, shape index: {}]   ;;  %s904_s2 = inlined_call_operand.vmem [shape: f32[1,256], index: 2, kind: input, shape index: {}]   ;;  %s905_s3 = inlined_call_operand.hbm [shape: f32[256,256], index: 3, kind: input, shape index: {}]   ;;  %s906_s4 = inlined_call_operand.vmem [shape: f32[1,256], index: 4, kind: input, shape index: {}]   ;;  %s907_s5 = inlined_call_operand.hbm [shape: f32[256,256], index: 5, kind: input, shape index: {}]   ;;  %s908_s6 = inlined_call_operand.vmem [shape: f32[1,256], index: 6, kind: input, shape index: {}]   ;;  %s909_s7 = inlined_call_operand.hbm [shape: f32[8,256], index: 7, kind: output, shape index: {}]  }
   0x1   :  { %13 = vsyncpa [#allocation6], 0 }
   0x2   :  { %14 = vsyncpa [#allocation9], 0 }
   0x3   :  { %15 = vsyncpa [#allocation4], 0  ;;  %s812_s24 = smov [#allocation5]  }
   0x4   :  { %s31_s25 = sshll.u32 %s812_s24, 4  ;;  %s32_s25 = int_to_ptr.vmem [resolvable:$true] %s31_s25 }
   0x5   :  { %s712_s26 = scalar_lea.vmem %s32_s25, 16384  ;;  %p717_p1 = scmp.lt.s32.totalorder %s32_s25, %s32_s25 }
   0x6   :  { %p713_p0 = scmp.ne.s32.totalorder %s32_s25, %s712_s26  ;;  %p718_p2 = scmp.lt.s32.totalorder %s712_s26, %s712_s26 }
   0x8   :  { %p719_p3 = por %p718_p2, %p717_p1 }
   0xa   :  { %p720_p4 = pnand %p719_p3, %p713_p0 }
   0xc   :  { %723 = shalt.err (!%p720_p4)
}
   0xd   :  { %s813_s27 = smov 256   ;;  %s814_s28 = smov 16  }
   0xe   :  { %37 = dma.hbm_to_vmem [thread:$0]  %s903_s1, 16384, %s32_s25, [#allocation6], %s813_s27, %s813_s27, %s814_s28  }
   0xf   :  { %s815_s8 = smov [#allocation2]   ;;  %s816_s10 = smov [#allocation7]  }
  0x10   :  { %s22_s9 = sshll.u32 %s815_s8, 4  ;;  %s45_s11 = sshll.u32 %s816_s10, 4  ;;  %s23_s9 = int_to_ptr.vmem [resolvable:$true] %s22_s9  ;;  %s46_s11 = int_to_ptr.vmem [resolvable:$true] %s45_s11 }
  0x11   :  { %s732_s12 = scalar_lea.vmem %s23_s9, 512  ;;  %p737_p6 = scmp.lt.s32.totalorder %s23_s9, %s23_s9 }
  0x12   :  { %p733_p5 = scmp.ne.s32.totalorder %s23_s9, %s732_s12  ;;  %p738_p7 = scmp.lt.s32.totalorder %s732_s12, %s732_s12 }
  0x14   :  { %p739_p8 = por %p738_p7, %p737_p6 }
  0x16   :  { %p740_p9 = pnand %p739_p8, %p733_p5 }
  0x18   :  { %743 = shalt.err (!%p740_p9)
}
  0x19   :  { %25 = dma.hbm_to_vmem [thread:$0]  %s902_s0, 512, %s23_s9, [#allocation3]  }
  0x1a   :  { %s752_s15 = scalar_lea.vmem %s46_s11, 8192  ;;  %p757_p11 = scmp.lt.s32.totalorder %s46_s11, %s46_s11 }
  0x1b   :  { %p753_p10 = scmp.ne.s32.totalorder %s46_s11, %s752_s15  ;;  %p758_p12 = scmp.lt.s32.totalorder %s752_s15, %s752_s15 }
  0x1d   :  { %p759_p13 = por %p758_p12, %p757_p11 }
  0x1f   :  { %p760_p0 = pnand %p759_p13, %p753_p10 }
  0x21   :  { %763 = shalt.err (!%p760_p0)
}
  0x22   :  { %51 = dma.hbm_to_vmem [thread:$0]  %s905_s3, 8192, %s46_s11, [#allocation6], %s813_s27, %s813_s27, %s814_s28  }
  0x23   :  { %s817_s17 = smov [#allocation8]  }
  0x24   :  { %s59_s18 = sshll.u32 %s817_s17, 4  ;;  %s60_s18 = int_to_ptr.vmem [resolvable:$true] %s59_s18 }
  0x25   :  { %s772_s19 = scalar_lea.vmem %s60_s18, 8192  ;;  %p777_p2 = scmp.lt.s32.totalorder %s60_s18, %s60_s18 }
  0x26   :  { %p773_p1 = scmp.ne.s32.totalorder %s60_s18, %s772_s19  ;;  %p778_p3 = scmp.lt.s32.totalorder %s772_s19, %s772_s19 }
  0x28   :  { %p779_p4 = por %p778_p3, %p777_p2 }
  0x2a   :  { %p780_p5 = pnand %p779_p4, %p773_p1 }
  0x2c   :  { %783 = shalt.err (!%p780_p5)
}
  0x2d   :  { %65 = dma.hbm_to_vmem [thread:$0]  %s907_s5, 8192, %s60_s18, [#allocation9], %s813_s27, %s813_s27, %s814_s28  }
  0x2e   :  { %804 = dma.done.wait [#allocation3], 512  }
  0x2f   :  { %805 = vsyncadd [#allocation3], 4294966784 }
  0x30   :  { %806 = dma.done.wait [#allocation6], 24576  }
  0x31   :  { %807 = vsyncadd [#allocation6], 4294942720 }
  0x32   :  { %808 = dma.done.wait [#allocation9], 8192  }
  0x33   :  { %809 = vsyncadd [#allocation9], 4294959104  ;;  %v115_v0 = vld [vmem:[#allocation5 + $0xf8] sm:$0xff]  ;;  %v114_v2 = vld [vmem:[#allocation5 + $0xf0] sm:$0xff] }
  0x34   :  { %v179_v1 = vld [vmem:[#allocation5 + $0x2f8] sm:$0xff]  ;;  %224 = vmatprep.subr.mxu0 %v115_v0  ;;  %v178_v3 = vld [vmem:[#allocation5 + $0x2f0] sm:$0xff]  ;;  %v113_v4 = vld [vmem:[#allocation5 + $0xe8] sm:$0xff] }
  0x35   :  { %295 = vmatprep.subr.mxu1 %v179_v1  ;;  %v177_v5 = vld [vmem:[#allocation5 + $0x2e8] sm:$0xff]  ;;  %225 = vmatpush1.msra.mxu0 %v114_v2  ;;  %v112_v6 = vld [vmem:[#allocation5 + $0xe0] sm:$0xff]  ;;  %v111_v8 = vld [vmem:[#allocation5 + $0xd8] sm:$0xff] }
  0x36   :  { %296 = vmatpush1.msra.mxu1 %v178_v3  ;;  %v176_v7 = vld [vmem:[#allocation5 + $0x2e0] sm:$0xff]  ;;  %226 = vmatprep.subr.mxu0 %v113_v4  ;;  %v175_v9 = vld [vmem:[#allocation5 + $0x2d8] sm:$0xff]  ;;  %v110_v10 = vld [vmem:[#allocation5 + $0xd0] sm:$0xff] }
  0x37   :  { %297 = vmatprep.subr.mxu1 %v177_v5  ;;  %v174_v11 = vld [vmem:[#allocation5 + $0x2d0] sm:$0xff]  ;;  %227 = vmatpush1.msra.mxu0 %v112_v6  ;;  %v109_v12 = vld [vmem:[#allocation5 + $0xc8] sm:$0xff]  ;;  %v108_v14 = vld [vmem:[#allocation5 + $0xc0] sm:$0xff] }
  0x38   :  { %298 = vmatpush1.msra.mxu1 %v176_v7  ;;  %v173_v13 = vld [vmem:[#allocation5 + $0x2c8] sm:$0xff]  ;;  %228 = vmatprep.subr.mxu0 %v111_v8  ;;  %v172_v15 = vld [vmem:[#allocation5 + $0x2c0] sm:$0xff]  ;;  %v107_v16 = vld [vmem:[#allocation5 + $0xb8] sm:$0xff] }
  0x39   :  { %299 = vmatprep.subr.mxu1 %v175_v9  ;;  %229 = vmatpush1.msra.mxu0 %v110_v10  ;;  %v171_v17 = vld [vmem:[#allocation5 + $0x2b8] sm:$0xff]  ;;  %v106_v18 = vld [vmem:[#allocation5 + $0xb0] sm:$0xff]  ;;  %v105_v20 = vld [vmem:[#allocation5 + $0xa8] sm:$0xff] }
  0x3a   :  { %300 = vmatpush1.msra.mxu1 %v174_v11  ;;  %230 = vmatprep.subr.mxu0 %v109_v12  ;;  %v170_v19 = vld [vmem:[#allocation5 + $0x2b0] sm:$0xff]  ;;  %v169_v21 = vld [vmem:[#allocation5 + $0x2a8] sm:$0xff]  ;;  %v104_v22 = vld [vmem:[#allocation5 + $0xa0] sm:$0xff] }
  0x3b   :  { %301 = vmatprep.subr.mxu1 %v173_v13  ;;  %231 = vmatpush1.msra.mxu0 %v108_v14  ;;  %v168_v23 = vld [vmem:[#allocation5 + $0x2a0] sm:$0xff]  ;;  %v103_v24 = vld [vmem:[#allocation5 + $0x98] sm:$0xff]  ;;  %v102_v26 = vld [vmem:[#allocation5 + $0x90] sm:$0xff] }
  0x3c   :  { %302 = vmatpush1.msra.mxu1 %v172_v15  ;;  %232 = vmatprep.subr.mxu0 %v107_v16  ;;  %v167_v25 = vld [vmem:[#allocation5 + $0x298] sm:$0xff]  ;;  %v166_v27 = vld [vmem:[#allocation5 + $0x290] sm:$0xff]  ;;  %v101_v28 = vld [vmem:[#allocation5 + $0x88] sm:$0xff] }
  0x3d   :  { %303 = vmatprep.subr.mxu1 %v171_v17  ;;  %233 = vmatpush1.msra.mxu0 %v106_v18  ;;  %v165_v29 = vld [vmem:[#allocation5 + $0x288] sm:$0xff]  ;;  %v100_v30 = vld [vmem:[#allocation5 + $0x80] sm:$0xff]  ;;  %v99_v32 = vld [vmem:[#allocation5 + $0x78] sm:$0xff] }
  0x3e   :  { %304 = vmatpush1.msra.mxu1 %v170_v19  ;;  %234 = vmatprep.subr.mxu0 %v105_v20  ;;  %v164_v31 = vld [vmem:[#allocation5 + $0x280] sm:$0xff]  ;;  %v163_v33 = vld [vmem:[#allocation5 + $0x278] sm:$0xff]  ;;  %v98_v34 = vld [vmem:[#allocation5 + $0x70] sm:$0xff] }
  0x3f   :  { %305 = vmatprep.subr.mxu1 %v169_v21  ;;  %235 = vmatpush1.msra.mxu0 %v104_v22  ;;  %v162_v35 = vld [vmem:[#allocation5 + $0x270] sm:$0xff]  ;;  %v97_v36 = vld [vmem:[#allocation5 + $0x68] sm:$0xff]  ;;  %v96_v38 = vld [vmem:[#allocation5 + $0x60] sm:$0xff] }
  0x40   :  { %306 = vmatpush1.msra.mxu1 %v168_v23  ;;  %236 = vmatprep.subr.mxu0 %v103_v24  ;;  %v161_v37 = vld [vmem:[#allocation5 + $0x268] sm:$0xff]  ;;  %v160_v39 = vld [vmem:[#allocation5 + $0x260] sm:$0xff]  ;;  %v95_v40 = vld [vmem:[#allocation5 + $0x58] sm:$0xff] }
  0x41   :  { %307 = vmatprep.subr.mxu1 %v167_v25  ;;  %237 = vmatpush1.msra.mxu0 %v102_v26  ;;  %v159_v41 = vld [vmem:[#allocation5 + $0x258] sm:$0xff]  ;;  %v94_v42 = vld [vmem:[#allocation5 + $0x50] sm:$0xff]  ;;  %v93_v44 = vld [vmem:[#allocation5 + $0x48] sm:$0xff] }
  0x42   :  { %308 = vmatpush1.msra.mxu1 %v166_v27  ;;  %238 = vmatprep.subr.mxu0 %v101_v28  ;;  %v158_v43 = vld [vmem:[#allocation5 + $0x250] sm:$0xff]  ;;  %v157_v45 = vld [vmem:[#allocation5 + $0x248] sm:$0xff]  ;;  %v92_v46 = vld [vmem:[#allocation5 + $0x40] sm:$0xff] }
  0x43   :  { %309 = vmatprep.subr.mxu1 %v165_v29  ;;  %239 = vmatpush1.msra.mxu0 %v100_v30  ;;  %v156_v47 = vld [vmem:[#allocation5 + $0x240] sm:$0xff]  ;;  %v91_v48 = vld [vmem:[#allocation5 + $0x38] sm:$0xff]  ;;  %v90_v50 = vld [vmem:[#allocation5 + $0x30] sm:$0xff] }
  0x44   :  { %310 = vmatpush1.msra.mxu1 %v164_v31  ;;  %240 = vmatprep.subr.mxu0 %v99_v32  ;;  %v155_v49 = vld [vmem:[#allocation5 + $0x238] sm:$0xff]  ;;  %v154_v51 = vld [vmem:[#allocation5 + $0x230] sm:$0xff]  ;;  %v89_v52 = vld [vmem:[#allocation5 + $0x28] sm:$0xff] }
  0x45   :  { %311 = vmatprep.subr.mxu1 %v163_v33  ;;  %241 = vmatpush1.msra.mxu0 %v98_v34  ;;  %v153_v53 = vld [vmem:[#allocation5 + $0x228] sm:$0xff]  ;;  %v88_v54 = vld [vmem:[#allocation5 + $0x20] sm:$0xff]  ;;  %v87_v56 = vld [vmem:[#allocation5 + $0x18] sm:$0xff] }
  0x46   :  { %312 = vmatpush1.msra.mxu1 %v162_v35  ;;  %242 = vmatprep.subr.mxu0 %v97_v36  ;;  %v152_v55 = vld [vmem:[#allocation5 + $0x220] sm:$0xff]  ;;  %v151_v57 = vld [vmem:[#allocation5 + $0x218] sm:$0xff]  ;;  %v86_v58 = vld [vmem:[#allocation5 + $0x10] sm:$0xff] }
  0x47   :  { %313 = vmatprep.subr.mxu1 %v161_v37  ;;  %243 = vmatpush1.msra.mxu0 %v96_v38  ;;  %v150_v59 = vld [vmem:[#allocation5 + $0x210] sm:$0xff]  ;;  %v85_v60 = vld [vmem:[#allocation5 + $0x8] sm:$0xff]  ;;  %v84_v62 = vld [vmem:[#allocation5] sm:$0xff] }
  0x48   :  { %314 = vmatpush1.msra.mxu1 %v160_v39  ;;  %244 = vmatprep.subr.mxu0 %v95_v40  ;;  %v149_v61 = vld [vmem:[#allocation5 + $0x208] sm:$0xff]  ;;  %v148_v63 = vld [vmem:[#allocation5 + $0x200] sm:$0xff]  ;;  %v147_v0 = vld [vmem:[#allocation5 + $0x1f8] sm:$0xff] }
  0x49   :  { %315 = vmatprep.subr.mxu1 %v159_v41  ;;  %245 = vmatpush1.msra.mxu0 %v94_v42  ;;  %v211_v1 = vld [vmem:[#allocation5 + $0x3f8] sm:$0xff]  ;;  %v146_v2 = vld [vmem:[#allocation5 + $0x1f0] sm:$0xff]  ;;  %v145_v4 = vld [vmem:[#allocation5 + $0x1e8] sm:$0xff] }
  0x4a   :  { %316 = vmatpush1.msra.mxu1 %v158_v43  ;;  %246 = vmatprep.subr.mxu0 %v93_v44  ;;  %v210_v3 = vld [vmem:[#allocation5 + $0x3f0] sm:$0xff]  ;;  %v209_v5 = vld [vmem:[#allocation5 + $0x3e8] sm:$0xff]  ;;  %v144_v6 = vld [vmem:[#allocation5 + $0x1e0] sm:$0xff] }
  0x4b   :  { %317 = vmatprep.subr.mxu1 %v157_v45  ;;  %247 = vmatpush1.msra.mxu0 %v92_v46  ;;  %v208_v7 = vld [vmem:[#allocation5 + $0x3e0] sm:$0xff]  ;;  %v143_v8 = vld [vmem:[#allocation5 + $0x1d8] sm:$0xff]  ;;  %v142_v10 = vld [vmem:[#allocation5 + $0x1d0] sm:$0xff] }
  0x4c   :  { %318 = vmatpush1.msra.mxu1 %v156_v47  ;;  %248 = vmatprep.subr.mxu0 %v91_v48  ;;  %v207_v9 = vld [vmem:[#allocation5 + $0x3d8] sm:$0xff]  ;;  %v206_v11 = vld [vmem:[#allocation5 + $0x3d0] sm:$0xff]  ;;  %v141_v12 = vld [vmem:[#allocation5 + $0x1c8] sm:$0xff] }
  0x4d   :  { %319 = vmatprep.subr.mxu1 %v155_v49  ;;  %249 = vmatpush1.msra.mxu0 %v90_v50  ;;  %v205_v13 = vld [vmem:[#allocation5 + $0x3c8] sm:$0xff]  ;;  %v140_v14 = vld [vmem:[#allocation5 + $0x1c0] sm:$0xff]  ;;  %v139_v16 = vld [vmem:[#allocation5 + $0x1b8] sm:$0xff] }
  0x4e   :  { %320 = vmatpush1.msra.mxu1 %v154_v51  ;;  %250 = vmatprep.subr.mxu0 %v89_v52  ;;  %v204_v15 = vld [vmem:[#allocation5 + $0x3c0] sm:$0xff]  ;;  %v203_v17 = vld [vmem:[#allocation5 + $0x3b8] sm:$0xff]  ;;  %v138_v18 = vld [vmem:[#allocation5 + $0x1b0] sm:$0xff] }
  0x4f   :  { %321 = vmatprep.subr.mxu1 %v153_v53  ;;  %251 = vmatpush1.msra.mxu0 %v88_v54  ;;  %v202_v19 = vld [vmem:[#allocation5 + $0x3b0] sm:$0xff]  ;;  %v137_v20 = vld [vmem:[#allocation5 + $0x1a8] sm:$0xff]  ;;  %v136_v22 = vld [vmem:[#allocation5 + $0x1a0] sm:$0xff] }
  0x50   :  { %322 = vmatpush1.msra.mxu1 %v152_v55  ;;  %252 = vmatprep.subr.mxu0 %v87_v56  ;;  %v201_v21 = vld [vmem:[#allocation5 + $0x3a8] sm:$0xff]  ;;  %v200_v23 = vld [vmem:[#allocation5 + $0x3a0] sm:$0xff]  ;;  %v135_v24 = vld [vmem:[#allocation5 + $0x198] sm:$0xff] }
  0x51   :  { %323 = vmatprep.subr.mxu1 %v151_v57  ;;  %253 = vmatpush1.msra.mxu0 %v86_v58  ;;  %v199_v25 = vld [vmem:[#allocation5 + $0x398] sm:$0xff]  ;;  %v134_v26 = vld [vmem:[#allocation5 + $0x190] sm:$0xff]  ;;  %v133_v28 = vld [vmem:[#allocation5 + $0x188] sm:$0xff] }
  0x52   :  { %324 = vmatpush1.msra.mxu1 %v150_v59  ;;  %254 = vmatprep.subr.mxu0 %v85_v60  ;;  %v198_v27 = vld [vmem:[#allocation5 + $0x390] sm:$0xff]  ;;  %v197_v29 = vld [vmem:[#allocation5 + $0x388] sm:$0xff]  ;;  %v132_v30 = vld [vmem:[#allocation5 + $0x180] sm:$0xff] }
  0x53   :  { %325 = vmatprep.subr.mxu1 %v149_v61  ;;  %255 = vmatpush1.msra.mxu0 %v84_v62  ;;  %v196_v31 = vld [vmem:[#allocation5 + $0x380] sm:$0xff]  ;;  %v131_v32 = vld [vmem:[#allocation5 + $0x178] sm:$0xff]  ;;  %v130_v34 = vld [vmem:[#allocation5 + $0x170] sm:$0xff] }
  0x54   :  { %326 = vmatpush1.msra.mxu1 %v148_v63  ;;  %256 = vmatprep.subr.mxu0 %v147_v0  ;;  %v195_v33 = vld [vmem:[#allocation5 + $0x378] sm:$0xff]  ;;  %v194_v35 = vld [vmem:[#allocation5 + $0x370] sm:$0xff]  ;;  %v129_v36 = vld [vmem:[#allocation5 + $0x168] sm:$0xff] }
  0x55   :  { %327 = vmatprep.subr.mxu1 %v211_v1  ;;  %257 = vmatpush2.msra.mxu0 %v146_v2  ;;  %v193_v37 = vld [vmem:[#allocation5 + $0x368] sm:$0xff]  ;;  %v128_v38 = vld [vmem:[#allocation5 + $0x160] sm:$0xff]  ;;  %v127_v40 = vld [vmem:[#allocation5 + $0x158] sm:$0xff] }
  0x56   :  { %328 = vmatpush2.msra.mxu1 %v210_v3  ;;  %258 = vmatprep.subr.mxu0 %v145_v4  ;;  %v192_v39 = vld [vmem:[#allocation5 + $0x360] sm:$0xff]  ;;  %v191_v41 = vld [vmem:[#allocation5 + $0x358] sm:$0xff]  ;;  %v126_v42 = vld [vmem:[#allocation5 + $0x150] sm:$0xff] }
  0x57   :  { %329 = vmatprep.subr.mxu1 %v209_v5  ;;  %259 = vmatpush2.msra.mxu0 %v144_v6  ;;  %v190_v43 = vld [vmem:[#allocation5 + $0x350] sm:$0xff]  ;;  %v125_v44 = vld [vmem:[#allocation5 + $0x148] sm:$0xff]  ;;  %v124_v46 = vld [vmem:[#allocation5 + $0x140] sm:$0xff] }
  0x58   :  { %330 = vmatpush2.msra.mxu1 %v208_v7  ;;  %260 = vmatprep.subr.mxu0 %v143_v8  ;;  %v189_v45 = vld [vmem:[#allocation5 + $0x348] sm:$0xff]  ;;  %v188_v47 = vld [vmem:[#allocation5 + $0x340] sm:$0xff]  ;;  %v123_v48 = vld [vmem:[#allocation5 + $0x138] sm:$0xff] }
  0x59   :  { %331 = vmatprep.subr.mxu1 %v207_v9  ;;  %261 = vmatpush2.msra.mxu0 %v142_v10  ;;  %v187_v49 = vld [vmem:[#allocation5 + $0x338] sm:$0xff]  ;;  %v122_v50 = vld [vmem:[#allocation5 + $0x130] sm:$0xff]  ;;  %v121_v52 = vld [vmem:[#allocation5 + $0x128] sm:$0xff] }
  0x5a   :  { %332 = vmatpush2.msra.mxu1 %v206_v11  ;;  %262 = vmatprep.subr.mxu0 %v141_v12  ;;  %v186_v51 = vld [vmem:[#allocation5 + $0x330] sm:$0xff]  ;;  %v185_v53 = vld [vmem:[#allocation5 + $0x328] sm:$0xff]  ;;  %v120_v54 = vld [vmem:[#allocation5 + $0x120] sm:$0xff] }
  0x5b   :  { %333 = vmatprep.subr.mxu1 %v205_v13  ;;  %263 = vmatpush2.msra.mxu0 %v140_v14  ;;  %v184_v55 = vld [vmem:[#allocation5 + $0x320] sm:$0xff]  ;;  %v119_v56 = vld [vmem:[#allocation5 + $0x118] sm:$0xff]  ;;  %v118_v58 = vld [vmem:[#allocation5 + $0x110] sm:$0xff] }
  0x5c   :  { %334 = vmatpush2.msra.mxu1 %v204_v15  ;;  %264 = vmatprep.subr.mxu0 %v139_v16  ;;  %v183_v57 = vld [vmem:[#allocation5 + $0x318] sm:$0xff]  ;;  %v182_v59 = vld [vmem:[#allocation5 + $0x310] sm:$0xff]  ;;  %v117_v60 = vld [vmem:[#allocation5 + $0x108] sm:$0xff] }
  0x5d   :  { %335 = vmatprep.subr.mxu1 %v203_v17  ;;  %265 = vmatpush2.msra.mxu0 %v138_v18  ;;  %v181_v61 = vld [vmem:[#allocation5 + $0x308] sm:$0xff]  ;;  %v116_v62 = vld [vmem:[#allocation5 + $0x100] sm:$0xff]  ;;  %v83_v1 = vld [vmem:[#allocation2 + $0x18] sm:$0xff] }
  0x5e   :  { %336 = vmatpush2.msra.mxu1 %v202_v19  ;;  %266 = vmatprep.subr.mxu0 %v137_v20  ;;  %v81_v63 = vld [vmem:[#allocation2 + $0x8] sm:$0xff]  ;;  %v180_v0 = vld [vmem:[#allocation5 + $0x300] sm:$0xff]  ;;  %v82_v3 = vld [vmem:[#allocation2 + $0x10] sm:$0xff] }
  0x5f   :  { %337 = vmatprep.subr.mxu1 %v201_v21  ;;  %267 = vmatpush2.msra.mxu0 %v136_v22  ;;  %v80_v2 = vld [vmem:[#allocation2] sm:$0xff]  ;;  %v399_v4 = vld [vmem:[#allocation7 + $0xf8] sm:$0xff]  ;;  %v398_v5 = vld [vmem:[#allocation7 + $0xf0] sm:$0xff] }
  0x60   :  { %338 = vmatpush2.msra.mxu1 %v200_v23  ;;  %268 = vmatprep.subr.mxu0 %v135_v24  ;;  %v397_v6 = vld [vmem:[#allocation7 + $0xe8] sm:$0xff]  ;;  %v396_v7 = vld [vmem:[#allocation7 + $0xe0] sm:$0xff]  ;;  %v395_v8 = vld [vmem:[#allocation7 + $0xd8] sm:$0xff] }
  0x61   :  { %339 = vmatprep.subr.mxu1 %v199_v25  ;;  %269 = vmatpush2.msra.mxu0 %v134_v26  ;;  %v394_v9 = vld [vmem:[#allocation7 + $0xd0] sm:$0xff]  ;;  %v393_v10 = vld [vmem:[#allocation7 + $0xc8] sm:$0xff]  ;;  %v392_v11 = vld [vmem:[#allocation7 + $0xc0] sm:$0xff] }
  0x62   :  { %340 = vmatpush2.msra.mxu1 %v198_v27  ;;  %270 = vmatprep.subr.mxu0 %v133_v28  ;;  %v391_v12 = vld [vmem:[#allocation7 + $0xb8] sm:$0xff]  ;;  %v390_v13 = vld [vmem:[#allocation7 + $0xb0] sm:$0xff]  ;;  %v389_v14 = vld [vmem:[#allocation7 + $0xa8] sm:$0xff] }
  0x63   :  { %341 = vmatprep.subr.mxu1 %v197_v29  ;;  %271 = vmatpush2.msra.mxu0 %v132_v30  ;;  %v388_v15 = vld [vmem:[#allocation7 + $0xa0] sm:$0xff]  ;;  %v387_v16 = vld [vmem:[#allocation7 + $0x98] sm:$0xff]  ;;  %v386_v17 = vld [vmem:[#allocation7 + $0x90] sm:$0xff] }
  0x64   :  { %342 = vmatpush2.msra.mxu1 %v196_v31  ;;  %272 = vmatprep.subr.mxu0 %v131_v32  ;;  %v385_v18 = vld [vmem:[#allocation7 + $0x88] sm:$0xff]  ;;  %v384_v19 = vld [vmem:[#allocation7 + $0x80] sm:$0xff]  ;;  %v383_v20 = vld [vmem:[#allocation7 + $0x78] sm:$0xff] }
  0x65   :  { %343 = vmatprep.subr.mxu1 %v195_v33  ;;  %273 = vmatpush2.msra.mxu0 %v130_v34  ;;  %v382_v21 = vld [vmem:[#allocation7 + $0x70] sm:$0xff]  ;;  %v381_v22 = vld [vmem:[#allocation7 + $0x68] sm:$0xff]  ;;  %v380_v23 = vld [vmem:[#allocation7 + $0x60] sm:$0xff] }
  0x66   :  { %344 = vmatpush2.msra.mxu1 %v194_v35  ;;  %274 = vmatprep.subr.mxu0 %v129_v36  ;;  %v379_v24 = vld [vmem:[#allocation7 + $0x58] sm:$0xff]  ;;  %v378_v25 = vld [vmem:[#allocation7 + $0x50] sm:$0xff]  ;;  %v377_v26 = vld [vmem:[#allocation7 + $0x48] sm:$0xff] }
  0x67   :  { %345 = vmatprep.subr.mxu1 %v193_v37  ;;  %275 = vmatpush2.msra.mxu0 %v128_v38  ;;  %v376_v27 = vld [vmem:[#allocation7 + $0x40] sm:$0xff]  ;;  %v375_v28 = vld [vmem:[#allocation7 + $0x38] sm:$0xff]  ;;  %v374_v29 = vld [vmem:[#allocation7 + $0x30] sm:$0xff] }
  0x68   :  { %346 = vmatpush2.msra.mxu1 %v192_v39  ;;  %276 = vmatprep.subr.mxu0 %v127_v40  ;;  %v373_v30 = vld [vmem:[#allocation7 + $0x28] sm:$0xff]  ;;  %v372_v31 = vld [vmem:[#allocation7 + $0x20] sm:$0xff]  ;;  %v371_v32 = vld [vmem:[#allocation7 + $0x18] sm:$0xff] }
  0x69   :  { %347 = vmatprep.subr.mxu1 %v191_v41  ;;  %277 = vmatpush2.msra.mxu0 %v126_v42  ;;  %v370_v33 = vld [vmem:[#allocation7 + $0x10] sm:$0xff]  ;;  %v369_v34 = vld [vmem:[#allocation7 + $0x8] sm:$0xff]  ;;  %v368_v35 = vld [vmem:[#allocation7] sm:$0xff] }
  0x6a   :  { %348 = vmatpush2.msra.mxu1 %v190_v43  ;;  %278 = vmatprep.subr.mxu0 %v125_v44  ;;  %v431_v36 = vld [vmem:[#allocation7 + $0x1f8] sm:$0xff]  ;;  %v430_v37 = vld [vmem:[#allocation7 + $0x1f0] sm:$0xff]  ;;  %v429_v38 = vld [vmem:[#allocation7 + $0x1e8] sm:$0xff] }
  0x6b   :  { %349 = vmatprep.subr.mxu1 %v189_v45  ;;  %279 = vmatpush2.msra.mxu0 %v124_v46  ;;  %v428_v39 = vld [vmem:[#allocation7 + $0x1e0] sm:$0xff]  ;;  %v427_v40 = vld [vmem:[#allocation7 + $0x1d8] sm:$0xff]  ;;  %v426_v41 = vld [vmem:[#allocation7 + $0x1d0] sm:$0xff] }
  0x6c   :  { %350 = vmatpush2.msra.mxu1 %v188_v47  ;;  %280 = vmatprep.subr.mxu0 %v123_v48  ;;  %v425_v42 = vld [vmem:[#allocation7 + $0x1c8] sm:$0xff]  ;;  %v424_v43 = vld [vmem:[#allocation7 + $0x1c0] sm:$0xff]  ;;  %v423_v44 = vld [vmem:[#allocation7 + $0x1b8] sm:$0xff] }
  0x6d   :  { %351 = vmatprep.subr.mxu1 %v187_v49  ;;  %281 = vmatpush2.msra.mxu0 %v122_v50  ;;  %v422_v45 = vld [vmem:[#allocation7 + $0x1b0] sm:$0xff]  ;;  %v421_v46 = vld [vmem:[#allocation7 + $0x1a8] sm:$0xff]  ;;  %v420_v47 = vld [vmem:[#allocation7 + $0x1a0] sm:$0xff] }
  0x6e   :  { %352 = vmatpush2.msra.mxu1 %v186_v51  ;;  %282 = vmatprep.subr.mxu0 %v121_v52  ;;  %v419_v48 = vld [vmem:[#allocation7 + $0x198] sm:$0xff]  ;;  %v418_v49 = vld [vmem:[#allocation7 + $0x190] sm:$0xff]  ;;  %v417_v50 = vld [vmem:[#allocation7 + $0x188] sm:$0xff] }
  0x6f   :  { %353 = vmatprep.subr.mxu1 %v185_v53  ;;  %283 = vmatpush2.msra.mxu0 %v120_v54  ;;  %v416_v51 = vld [vmem:[#allocation7 + $0x180] sm:$0xff]  ;;  %v415_v52 = vld [vmem:[#allocation7 + $0x178] sm:$0xff]  ;;  %v414_v53 = vld [vmem:[#allocation7 + $0x170] sm:$0xff] }
  0x70   :  { %354 = vmatpush2.msra.mxu1 %v184_v55  ;;  %284 = vmatprep.subr.mxu0 %v119_v56  ;;  %v413_v54 = vld [vmem:[#allocation7 + $0x168] sm:$0xff]  ;;  %v412_v55 = vld [vmem:[#allocation7 + $0x160] sm:$0xff]  ;;  %v411_v56 = vld [vmem:[#allocation7 + $0x158] sm:$0xff] }
  0x71   :  { %355 = vmatprep.subr.mxu1 %v183_v57  ;;  %285 = vmatpush2.msra.mxu0 %v118_v58  ;;  %v410_v57 = vld [vmem:[#allocation7 + $0x150] sm:$0xff]  ;;  %v409_v58 = vld [vmem:[#allocation7 + $0x148] sm:$0xff] }
  0x72   :  { %356 = vmatpush2.msra.mxu1 %v182_v59  ;;  %286 = vmatprep.subr.mxu0 %v117_v60  ;;  %v408_v59 = vld [vmem:[#allocation7 + $0x140] sm:$0xff]  ;;  %v407_v60 = vld [vmem:[#allocation7 + $0x138] sm:$0xff] }
  0x73   :  { %357 = vmatprep.subr.mxu1 %v181_v61  ;;  %287 = vmatpush2.msra.mxu0 %v116_v62  ;;  %v406_v61 = vld [vmem:[#allocation7 + $0x130] sm:$0xff]  ;;  %v405_v62 = vld [vmem:[#allocation7 + $0x128] sm:$0xff] }
  0x74   :  { %288 = vmatprep.mubr.f32.mxu0 %v81_v63  ;;  %358 = vmatpush2.msra.mxu1 %v180_v0  ;;  %v404_v63 = vld [vmem:[#allocation7 + $0x120] sm:$0xff]  ;;  %v403_v0 = vld [vmem:[#allocation7 + $0x118] sm:$0xff] }
  0x75   :  { %359 = vmatprep.mubr.f32.mxu1 %v83_v1  ;;  %289 = vmatmul.mubr.f32.vlgmr.msra.gmra.mxu0 %v80_v2  ;;  %v402_v1 = vld [vmem:[#allocation7 + $0x110] sm:$0xff]  ;;  %v401_v2 = vld [vmem:[#allocation7 + $0x108] sm:$0xff] }
  0x76   :  { %360 = vmatmul.mubr.f32.vlgmr.msra.gmra.mxu1 %v82_v3  ;;  %444 = vmatprep.subr.mxu0 %v399_v4  ;;  %v400_v3 = vld [vmem:[#allocation7 + $0x100] sm:$0xff]  ;;  %v548_v4 = vld [vmem:[#allocation8 + $0xf8] sm:$0xff] }
  0x77   :  { %445 = vmatpush1.msra.mxu0 %v398_v5  ;;  %v547_v5 = vld [vmem:[#allocation8 + $0xf0] sm:$0xff]  ;;  %593 = vmatprep.subr.mxu1 %v548_v4  ;;  %v565_v4 = vld [vmem:[#allocation8 + $0x180] sm:$0xff] }
  0x78   :  { %446 = vmatprep.subr.mxu0 %v397_v6  ;;  %v546_v6 = vld [vmem:[#allocation8 + $0xe8] sm:$0xff]  ;;  %594 = vmatpush1.msra.mxu1 %v547_v5  ;;  %v564_v5 = vld [vmem:[#allocation8 + $0x178] sm:$0xff] }
  0x79   :  { %447 = vmatpush1.msra.mxu0 %v396_v7  ;;  %v545_v7 = vld [vmem:[#allocation8 + $0xe0] sm:$0xff]  ;;  %595 = vmatprep.subr.mxu1 %v546_v6  ;;  %v563_v6 = vld [vmem:[#allocation8 + $0x170] sm:$0xff] }
  0x7a   :  { %448 = vmatprep.subr.mxu0 %v395_v8  ;;  %v544_v8 = vld [vmem:[#allocation8 + $0xd8] sm:$0xff]  ;;  %596 = vmatpush1.msra.mxu1 %v545_v7  ;;  %v562_v7 = vld [vmem:[#allocation8 + $0x168] sm:$0xff] }
  0x7b   :  { %449 = vmatpush1.msra.mxu0 %v394_v9  ;;  %v543_v9 = vld [vmem:[#allocation8 + $0xd0] sm:$0xff]  ;;  %597 = vmatprep.subr.mxu1 %v544_v8  ;;  %v561_v8 = vld [vmem:[#allocation8 + $0x160] sm:$0xff] }
  0x7c   :  { %450 = vmatprep.subr.mxu0 %v393_v10  ;;  %v542_v10 = vld [vmem:[#allocation8 + $0xc8] sm:$0xff]  ;;  %598 = vmatpush1.msra.mxu1 %v543_v9  ;;  %v560_v9 = vld [vmem:[#allocation8 + $0x158] sm:$0xff] }
  0x7d   :  { %451 = vmatpush1.msra.mxu0 %v392_v11  ;;  %v541_v11 = vld [vmem:[#allocation8 + $0xc0] sm:$0xff]  ;;  %599 = vmatprep.subr.mxu1 %v542_v10  ;;  %v559_v10 = vld [vmem:[#allocation8 + $0x150] sm:$0xff] }
  0x7e   :  { %452 = vmatprep.subr.mxu0 %v391_v12  ;;  %v540_v12 = vld [vmem:[#allocation8 + $0xb8] sm:$0xff]  ;;  %600 = vmatpush1.msra.mxu1 %v541_v11  ;;  %v558_v11 = vld [vmem:[#allocation8 + $0x148] sm:$0xff] }
  0x7f   :  { %453 = vmatpush1.msra.mxu0 %v390_v13  ;;  %v539_v13 = vld [vmem:[#allocation8 + $0xb0] sm:$0xff]  ;;  %601 = vmatprep.subr.mxu1 %v540_v12  ;;  %v557_v12 = vld [vmem:[#allocation8 + $0x140] sm:$0xff] }
  0x80   :  { %454 = vmatprep.subr.mxu0 %v389_v14  ;;  %v538_v14 = vld [vmem:[#allocation8 + $0xa8] sm:$0xff]  ;;  %602 = vmatpush1.msra.mxu1 %v539_v13  ;;  %v556_v13 = vld [vmem:[#allocation8 + $0x138] sm:$0xff] }
  0x81   :  { %455 = vmatpush1.msra.mxu0 %v388_v15  ;;  %v537_v15 = vld [vmem:[#allocation8 + $0xa0] sm:$0xff]  ;;  %603 = vmatprep.subr.mxu1 %v538_v14  ;;  %v555_v14 = vld [vmem:[#allocation8 + $0x130] sm:$0xff] }
  0x82   :  { %456 = vmatprep.subr.mxu0 %v387_v16  ;;  %v536_v16 = vld [vmem:[#allocation8 + $0x98] sm:$0xff]  ;;  %604 = vmatpush1.msra.mxu1 %v537_v15  ;;  %v554_v15 = vld [vmem:[#allocation8 + $0x128] sm:$0xff] }
  0x83   :  { %457 = vmatpush1.msra.mxu0 %v386_v17  ;;  %v535_v17 = vld [vmem:[#allocation8 + $0x90] sm:$0xff]  ;;  %605 = vmatprep.subr.mxu1 %v536_v16  ;;  %v553_v16 = vld [vmem:[#allocation8 + $0x120] sm:$0xff] }
  0x84   :  { %458 = vmatprep.subr.mxu0 %v385_v18  ;;  %v534_v18 = vld [vmem:[#allocation8 + $0x88] sm:$0xff]  ;;  %606 = vmatpush1.msra.mxu1 %v535_v17  ;;  %v552_v17 = vld [vmem:[#allocation8 + $0x118] sm:$0xff] }
  0x85   :  { %459 = vmatpush1.msra.mxu0 %v384_v19  ;;  %v533_v19 = vld [vmem:[#allocation8 + $0x80] sm:$0xff]  ;;  %607 = vmatprep.subr.mxu1 %v534_v18  ;;  %v551_v18 = vld [vmem:[#allocation8 + $0x110] sm:$0xff] }
  0x86   :  { %460 = vmatprep.subr.mxu0 %v383_v20  ;;  %v532_v20 = vld [vmem:[#allocation8 + $0x78] sm:$0xff]  ;;  %608 = vmatpush1.msra.mxu1 %v533_v19  ;;  %v550_v19 = vld [vmem:[#allocation8 + $0x108] sm:$0xff] }
  0x87   :  { %461 = vmatpush1.msra.mxu0 %v382_v21  ;;  %v531_v21 = vld [vmem:[#allocation8 + $0x70] sm:$0xff]  ;;  %609 = vmatprep.subr.mxu1 %v532_v20  ;;  %v549_v20 = vld [vmem:[#allocation8 + $0x100] sm:$0xff] }
  0x88   :  { %462 = vmatprep.subr.mxu0 %v381_v22  ;;  %v530_v22 = vld [vmem:[#allocation8 + $0x68] sm:$0xff]  ;;  %610 = vmatpush1.msra.mxu1 %v531_v21  ;;  %v432_v21 = vld [vmem:[%s906_s4] sm:$0x3]  ;;  %s818_s4 = smov [#allocation10]  }
  0x89   :  { %463 = vmatpush1.msra.mxu0 %v380_v23  ;;  %v529_v23 = vld [vmem:[#allocation8 + $0x60] sm:$0xff]  ;;  %611 = vmatprep.subr.mxu1 %v530_v22  ;;  %s674_s24 = sshll.u32 %s818_s4, 4  ;;  %s675_s24 = int_to_ptr.vmem [resolvable:$true] %s674_s24 }
  0x8a   :  { %464 = vmatprep.subr.mxu0 %v379_v24  ;;  %v528_v24 = vld [vmem:[#allocation8 + $0x58] sm:$0xff]  ;;  %612 = vmatpush1.msra.mxu1 %v529_v23  ;;  %s784_s25 = scalar_lea.vmem %s675_s24, 256  ;;  %p789_p7 = scmp.lt.s32.totalorder %s675_s24, %s675_s24 }
  0x8b   :  { %465 = vmatpush1.msra.mxu0 %v378_v25  ;;  %v527_v25 = vld [vmem:[#allocation8 + $0x50] sm:$0xff]  ;;  %613 = vmatprep.subr.mxu1 %v528_v24  ;;  %p785_p6 = scmp.ne.s32.totalorder %s675_s24, %s784_s25  ;;  %p790_p8 = scmp.lt.s32.totalorder %s784_s25, %s784_s25 }
  0x8c   :  { %466 = vmatprep.subr.mxu0 %v377_v26  ;;  %v526_v26 = vld [vmem:[#allocation8 + $0x48] sm:$0xff]  ;;  %614 = vmatpush1.msra.mxu1 %v527_v25 }
  0x8d   :  { %467 = vmatpush1.msra.mxu0 %v376_v27  ;;  %v525_v27 = vld [vmem:[#allocation8 + $0x40] sm:$0xff]  ;;  %615 = vmatprep.subr.mxu1 %v526_v26  ;;  %p791_p9 = por %p790_p8, %p789_p7 }
  0x8e   :  { %468 = vmatprep.subr.mxu0 %v375_v28  ;;  %v524_v28 = vld [vmem:[#allocation8 + $0x38] sm:$0xff]  ;;  %616 = vmatpush1.msra.mxu1 %v525_v27 }
  0x8f   :  { %469 = vmatpush1.msra.mxu0 %v374_v29  ;;  %v523_v29 = vld [vmem:[#allocation8 + $0x30] sm:$0xff]  ;;  %617 = vmatprep.subr.mxu1 %v524_v28  ;;  %p792_p10 = pnand %p791_p9, %p785_p6 }
  0x90   :  { %470 = vmatprep.subr.mxu0 %v373_v30  ;;  %v522_v30 = vld [vmem:[#allocation8 + $0x28] sm:$0xff]  ;;  %618 = vmatpush1.msra.mxu1 %v523_v29 }
  0x91   :  { %471 = vmatpush1.msra.mxu0 %v372_v31  ;;  %v521_v31 = vld [vmem:[#allocation8 + $0x20] sm:$0xff]  ;;  %619 = vmatprep.subr.mxu1 %v522_v30 }
  0x92   :  { %472 = vmatprep.subr.mxu0 %v371_v32  ;;  %v520_v32 = vld [vmem:[#allocation8 + $0x18] sm:$0xff]  ;;  %620 = vmatpush1.msra.mxu1 %v521_v31  ;;  %v581_v30 = vld [vmem:[%s908_s6] sm:$0x3] }
  0x93   :  { %473 = vmatpush1.msra.mxu0 %v370_v33  ;;  %v519_v33 = vld [vmem:[#allocation8 + $0x10] sm:$0xff]  ;;  %621 = vmatprep.subr.mxu1 %v520_v32 }
  0x94   :  { %474 = vmatprep.subr.mxu0 %v369_v34  ;;  %v518_v34 = vld [vmem:[#allocation8 + $0x8] sm:$0xff]  ;;  %622 = vmatpush1.msra.mxu1 %v519_v33 }
  0x95   :  { %475 = vmatpush1.msra.mxu0 %v368_v35  ;;  %v517_v35 = vld [vmem:[#allocation8] sm:$0xff]  ;;  %623 = vmatprep.subr.mxu1 %v518_v34 }
  0x96   :  { %476 = vmatprep.subr.mxu0 %v431_v36  ;;  %v580_v36 = vld [vmem:[#allocation8 + $0x1f8] sm:$0xff]  ;;  %624 = vmatpush1.msra.mxu1 %v517_v35 }
  0x97   :  { %477 = vmatpush2.msra.mxu0 %v430_v37  ;;  %v579_v37 = vld [vmem:[#allocation8 + $0x1f0] sm:$0xff]  ;;  %625 = vmatprep.subr.mxu1 %v580_v36 }
  0x98   :  { %478 = vmatprep.subr.mxu0 %v429_v38  ;;  %v578_v38 = vld [vmem:[#allocation8 + $0x1e8] sm:$0xff]  ;;  %626 = vmatpush2.msra.mxu1 %v579_v37 }
  0x99   :  { %479 = vmatpush2.msra.mxu0 %v428_v39  ;;  %v577_v39 = vld [vmem:[#allocation8 + $0x1e0] sm:$0xff]  ;;  %627 = vmatprep.subr.mxu1 %v578_v38 }
  0x9a   :  { %480 = vmatprep.subr.mxu0 %v427_v40  ;;  %v576_v40 = vld [vmem:[#allocation8 + $0x1d8] sm:$0xff]  ;;  %628 = vmatpush2.msra.mxu1 %v577_v39 }
  0x9b   :  { %481 = vmatpush2.msra.mxu0 %v426_v41  ;;  %v575_v41 = vld [vmem:[#allocation8 + $0x1d0] sm:$0xff]  ;;  %629 = vmatprep.subr.mxu1 %v576_v40 }
  0x9c   :  { %482 = vmatprep.subr.mxu0 %v425_v42  ;;  %v574_v42 = vld [vmem:[#allocation8 + $0x1c8] sm:$0xff]  ;;  %630 = vmatpush2.msra.mxu1 %v575_v41 }
  0x9d   :  { %483 = vmatpush2.msra.mxu0 %v424_v43  ;;  %v573_v43 = vld [vmem:[#allocation8 + $0x1c0] sm:$0xff]  ;;  %631 = vmatprep.subr.mxu1 %v574_v42 }
  0x9e   :  { %484 = vmatprep.subr.mxu0 %v423_v44  ;;  %v572_v44 = vld [vmem:[#allocation8 + $0x1b8] sm:$0xff]  ;;  %632 = vmatpush2.msra.mxu1 %v573_v43 }
  0x9f   :  { %485 = vmatpush2.msra.mxu0 %v422_v45  ;;  %v571_v45 = vld [vmem:[#allocation8 + $0x1b0] sm:$0xff]  ;;  %633 = vmatprep.subr.mxu1 %v572_v44 }
  0xa0   :  { %486 = vmatprep.subr.mxu0 %v421_v46  ;;  %v570_v46 = vld [vmem:[#allocation8 + $0x1a8] sm:$0xff]  ;;  %634 = vmatpush2.msra.mxu1 %v571_v45 }
  0xa1   :  { %487 = vmatpush2.msra.mxu0 %v420_v47  ;;  %v569_v47 = vld [vmem:[#allocation8 + $0x1a0] sm:$0xff]  ;;  %635 = vmatprep.subr.mxu1 %v570_v46 }
  0xa2   :  { %488 = vmatprep.subr.mxu0 %v419_v48  ;;  %636 = vmatpush2.msra.mxu1 %v569_v47  ;;  %v214_v48 = vlaneseq }
  0xa3   :  { %489 = vmatpush2.msra.mxu0 %v418_v49 }
  0xa4   :  { %490 = vmatprep.subr.mxu0 %v417_v50  ;;  %v215_v49 = vshrl.u32 %v214_v48, 7 }
  0xa5   :  { %491 = vmatpush2.msra.mxu0 %v416_v51  ;;  %v212_v51 = vld [vmem:[%s904_s2] sm:$0x3] }
  0xa6   :  { %492 = vmatprep.subr.mxu0 %v415_v52  ;;  %v880_v50 = vsub.s32 0, %v215_v49  ;;  %v885_v52 = vsub.s32 1, %v215_v49 }
  0xa7   :  { %493 = vmatpush2.msra.mxu0 %v414_v53 }
  0xa8   :  { %494 = vmatprep.subr.mxu0 %v413_v54  ;;  %v217_v53 = vrot.slane %v212_v51, %v880_v50  ;;  %v221_v54 = vrot.slane %v212_v51, %v885_v52  ;;  %v437_v22 = vrot.slane %v432_v21, %v880_v50  ;;  %v441_v23 = vrot.slane %v432_v21, %v885_v52 }
  0xa9   :  { %495 = vmatpush2.msra.mxu0 %v412_v55  ;;  %v586_v31 = vrot.slane %v581_v30, %v880_v50  ;;  %v590_v32 = vrot.slane %v581_v30, %v885_v52 }
  0xaa   :  { %496 = vmatprep.subr.mxu0 %v411_v56 }
  0xab   :  { %497 = vmatpush2.msra.mxu0 %v410_v57 }
  0xac   :  { %498 = vmatprep.subr.mxu0 %v409_v58 }
  0xad   :  { %499 = vmatpush2.msra.mxu0 %v408_v59 }
  0xae   :  { %500 = vmatprep.subr.mxu0 %v407_v60 }
  0xaf   :  { %501 = vmatpush2.msra.mxu0 %v406_v61 }
  0xb0   :  { %502 = vmatprep.subr.mxu0 %v405_v62 }
  0xb1   :  { %503 = vmatpush2.msra.mxu0 %v404_v63 }
  0xb2   :  { %504 = vmatprep.subr.mxu0 %v403_v0 }
  0xb3   :  { %505 = vmatpush2.msra.mxu0 %v402_v1  ;;  %v568_v1 = vld [vmem:[#allocation8 + $0x198] sm:$0xff] }
  0xb4   :  { %506 = vmatprep.subr.mxu0 %v401_v2  ;;  %637 = vmatprep.subr.mxu1 %v568_v1  ;;  %v567_v2 = vld [vmem:[#allocation8 + $0x190] sm:$0xff] }
  0xb5   :  { %507 = vmatpush2.msra.mxu0 %v400_v3  ;;  %638 = vmatpush2.msra.mxu1 %v567_v2  ;;  %v566_v3 = vld [vmem:[#allocation8 + $0x188] sm:$0xff] }
  0xb6   :  { %639 = vmatprep.subr.mxu1 %v566_v3 }
  0xb7   :  { %640 = vmatpush2.msra.mxu1 %v565_v4 }
  0xb8   :  { %641 = vmatprep.subr.mxu1 %v564_v5 }
  0xb9   :  { %642 = vmatpush2.msra.mxu1 %v563_v6 }
  0xba   :  { %643 = vmatprep.subr.mxu1 %v562_v7 }
  0xbb   :  { %644 = vmatpush2.msra.mxu1 %v561_v8 }
  0xbc   :  { %645 = vmatprep.subr.mxu1 %v560_v9 }
  0xbd   :  { %646 = vmatpush2.msra.mxu1 %v559_v10 }
  0xbe   :  { %647 = vmatprep.subr.mxu1 %v558_v11 }
  0xbf   :  { %648 = vmatpush2.msra.mxu1 %v557_v12 }
  0xc0   :  { %649 = vmatprep.subr.mxu1 %v556_v13 }
  0xc1   :  { %650 = vmatpush2.msra.mxu1 %v555_v14 }
  0xc2   :  { %651 = vmatprep.subr.mxu1 %v554_v15 }
  0xc3   :  { %652 = vmatpush2.msra.mxu1 %v553_v16 }
  0xc4   :  { %653 = vmatprep.subr.mxu1 %v552_v17 }
  0xc5   :  { %654 = vmatpush2.msra.mxu1 %v551_v18 }
  0xc6   :  { %655 = vmatprep.subr.mxu1 %v550_v19 }
  0xc7   :  { %656 = vmatpush2.msra.mxu1 %v549_v20 }
 0x135   :  { %v290_v55 = vpop.f32.mrf.mxu0 }
 0x136   :  { %v361_v56 = vpop.f32.mrf.mxu1  ;;  %v291_v57 = vadd.f32 %v290_v55, %v217_v53 }
 0x137   :  { %v292_v58 = vpop.f32.mrf.mxu0 }
 0x138   :  { %v293_v59 = vadd.f32 %v292_v58, %v221_v54  ;;  %v362_v60 = vadd.f32 %v361_v56, %v291_v57  ;;  %v363_v61 = vpop.f32.mrf.mxu1 }
 0x13a   :  { %v364_v62 = vadd.f32 %v363_v61, %v293_v59 }
 0x13c   :  { %692 = vtanh.f32 %v364_v62 }
 0x13d   :  { %694 = vtanh.f32 %v362_v60 }
 0x149   :  { %v693_v63 = vpop.eup %692 }
 0x14a   :  { %v695_v0 = vpop.eup %694  ;;  %508 = vmatprep.mubr.f32.mxu0 %v693_v63 }
 0x14b   :  { %509 = vmatmul.mubr.f32.vlgmr.msra.gmra.mxu0 %v695_v0 }
 0x20b   :  { %v510_v24 = vpop.f32.mrf.mxu0 }
 0x20c   :  { %v511_v25 = vadd.f32 %v510_v24, %v437_v22 }
 0x20d   :  { %v512_v26 = vpop.f32.mrf.mxu0 }
 0x20e   :  { %v513_v27 = vadd.f32 %v512_v26, %v441_v23 }
 0x210   :  { %696 = vtanh.f32 %v513_v27 }
 0x211   :  { %698 = vtanh.f32 %v511_v25 }
 0x21d   :  { %v697_v28 = vpop.eup %696 }
 0x21e   :  { %v699_v29 = vpop.eup %698  ;;  %657 = vmatprep.mubr.f32.mxu1 %v697_v28 }
 0x21f   :  { %658 = vmatmul.mubr.f32.vlgmr.msra.gmra.mxu1 %v699_v29 }
 0x2df   :  { %v659_v33 = vpop.f32.mrf.mxu1 }
 0x2e0   :  { %v660_v34 = vadd.f32 %v659_v33, %v586_v31 }
 0x2e1   :  { %v661_v35 = vpop.f32.mrf.mxu1 }
 0x2e2   :  { %700 = vtanh.f32 %v660_v34  ;;  %v662_v36 = vadd.f32 %v661_v35, %v590_v32 }
 0x2e4   :  { %702 = vtanh.f32 %v662_v36 }
 0x2ef   :  { %v701_v37 = vpop.eup %700 }
 0x2f0   :  { %666 = vst [vmem:[#allocation10] sm:$0xff] %v701_v37 }
 0x2f1   :  { %v703_v38 = vpop.eup %702 }
 0x2f2   :  { %667 = vst [vmem:[#allocation10 + $0x8] sm:$0xff] %v703_v38 }
 0x2f3   :  { %795 = shalt.err (!%p792_p10)
}
 0x2f4   :  { %677 = dma.vmem_to_hbm [thread:$0]  %s675_s24, 256, %s909_s7, [#allocation4]  }
 0x2f5   :  { %810 = dma.done.wait [#allocation4], 256  }
 0x2f6   :  { %811 = vsyncadd [#allocation4], 4294967040 }
 0x2f7   :  { %681 = vsyncpa [#allocation3], 1 }
 0x2f8   :  { %682 = vsyncpa [#allocation6], 1 }
 0x2f9   :  { %683 = vsyncpa [#allocation9], 1 }
 0x2fa   :  { %684 = vsyncpa [#allocation4], 1 }

</bundles_post_ra>
